<compile_context>
chip_gen: v7x
topology: tpu7x:2x2x1
jax: 0.10.0
libtpu: 0.0.40
codegen_flags: <defaults>
</compile_context>

<pallas_src>
import jax
import jax.numpy as jnp
from jax.experimental import pallas as pl
from jax.experimental.pallas import tpu as pltpu

_MiB = 1024 * 1024


def _param_copy_kernel(p_ref, o_ref):
    # Identity: stream the parameter block through VMEM to the output.
    o_ref[...] = p_ref[...]


def _sublane_multiple(dtype):
    # Sub-32-bit dtypes pack along sublanes: match the packing granularity so
    # copies use full-width loads/stores.
    bits = jnp.dtype(dtype).itemsize * 8
    return {32: 8, 16: 16, 8: 32}.get(bits, 8)


def _byte_budgets():
    """(single_block_cap, tile_target) bytes, chosen per TPU generation.

    v5e: 16 MiB scoped VMEM default -> stay conservative.
    v6e/v7x (and unknown/newer): 32 MiB scoped default -> larger blocks to cut
    the ~0.35 us per-grid-step overhead fraction.
    """
    try:
        kind = jax.devices()[0].device_kind.lower()
    except Exception:
        kind = ""
    if "v5" in kind and ("lite" in kind or "v5e" in kind):
        return 4 * _MiB, 2 * _MiB
    if "v5" in kind:  # be conservative for any v5 variant we can't identify
        return 4 * _MiB, 2 * _MiB
    return 8 * _MiB, 4 * _MiB


def _round_down(x, m):
    return max(m, (x // m) * m)


def _materialize_param(param):
    """Tiled VMEM identity copy of the parameter (only used when a distinct,
    freshly written output buffer is explicitly required)."""
    single_block_cap, tile_target = _byte_budgets()

    orig_shape = param.shape
    # Normalize to 2-D (rows, lanes) so tiling rules are uniform.
    if param.ndim == 2:
        p2 = param
    elif param.ndim >= 1:
        p2 = param.reshape(-1, param.shape[-1]) if param.ndim > 1 else param.reshape(1, -1)
    else:
        p2 = param.reshape(1, 1)

    rows, cols = p2.shape
    itemsize = jnp.dtype(p2.dtype).itemsize
    total_bytes = rows * cols * itemsize
    cost = pl.CostEstimate(flops=0, transcendentals=0,
                           bytes_accessed=2 * total_bytes)

    if total_bytes <= single_block_cap:
        # Small / mid-size parameter: single full-array block, no grid -> no
        # per-step pipeline overhead.  Full dims always satisfy the (8,128)
        # block rule.
        out = pl.pallas_call(
            _param_copy_kernel,
            out_shape=jax.ShapeDtypeStruct((rows, cols), p2.dtype),
            in_specs=[pl.BlockSpec((rows, cols), lambda: (0, 0))],
            out_specs=pl.BlockSpec((rows, cols), lambda: (0, 0)),
            cost_estimate=cost,
        )(p2)
        return out.reshape(orig_shape)

    # Large parameter: fixed dtype-aligned tiles with a cdiv grid (Pallas masks
    # the last partial block, so no divisibility requirement).
    sub = _sublane_multiple(p2.dtype)

    # Column tile: keep the full width (lane-dense) when one sublane-group of
    # full-width rows fits the budget; otherwise tile columns in 128-lane
    # multiples so stores stay unmasked full-width vst.
    if cols * itemsize * sub <= tile_target:
        tile_cols = cols
    else:
        tile_cols = _round_down(tile_target // (itemsize * sub), 128)
        tile_cols = min(tile_cols, _round_down(cols, 128)) if cols >= 128 else cols

    # Row tile: largest sublane-aligned count that keeps the block under budget.
    tile_rows = _round_down(tile_target // (tile_cols * itemsize), sub)
    if tile_rows >= rows:
        tile_rows = rows  # full dim always satisfies the (8,128) rule

    grid = (pl.cdiv(rows, tile_rows), pl.cdiv(cols, tile_cols))
    out = pl.pallas_call(
        _param_copy_kernel,
        out_shape=jax.ShapeDtypeStruct((rows, cols), p2.dtype),
        grid=grid,
        in_specs=[pl.BlockSpec((tile_rows, tile_cols), lambda i, j: (i, j))],
        out_specs=pl.BlockSpec((tile_rows, tile_cols), lambda i, j: (i, j)),
        compiler_params=pltpu.CompilerParams(
            # Independent copy tiles: lets megacore parts shard the grid;
            # harmless no-op on single-TC v5e/v6e.
            dimension_semantics=("parallel", "parallel"),
        ),
        cost_estimate=cost,
    )(p2)
    return out.reshape(orig_shape)


def parameter_layer_forward(param, x=None, *, materialize=False):
    """Pallas equivalent of ParameterLayer.forward: ignore x, return the parameter.

    The PyTorch forward is a pure identity on the stored parameter, so the
    default path returns `param` directly — no kernel, no HBM read+write
    traffic.  Pass materialize=True only if a distinct, freshly written output
    buffer is contractually required; that path runs a minimal-overhead Pallas
    copy kernel (jnp.copy(param) is an equivalent non-Pallas alternative).
    """
    del x  # matches `del x` in the PyTorch module
    if not materialize:
        return param
    return _materialize_param(param)


if __name__ == "__main__":
    key = jax.random.PRNGKey(0)
    k_param, k_x = jax.random.split(key)

    # Deterministic parameter initialization (TPU-friendly: sublane multiple
    # of 8, lane dim 128).
    P_ROWS, P_COLS = 32, 128
    param = jax.random.normal(k_param, (P_ROWS, P_COLS), dtype=jnp.float32)

    # Example input consistent with an NCHW activation; it is ignored.
    x = jax.random.normal(k_x, (2, 4, 16, 16), dtype=jnp.float32)

    # Zero-cost default path (the recommended production path).
    out_fast = parameter_layer_forward(param, x)
    out_fast = jax.block_until_ready(out_fast)

    # Materializing Pallas path (runs the kernel once): 16 KiB parameter takes
    # the single-block, no-grid path.
    out_kernel = parameter_layer_forward(param, x, materialize=True)
    out_kernel = jax.block_until_ready(out_kernel)

    # Correctness: both outputs must be exactly the parameter.
    assert out_fast.shape == param.shape and out_fast.dtype == param.dtype
    assert out_kernel.shape == param.shape and out_kernel.dtype == param.dtype
    assert bool(jnp.all(out_fast == param))
    assert bool(jnp.all(out_kernel == param))

    print("KERNEL_OK")
</pallas_src>

<mosaic_0001>
module attributes {stable_mosaic.version = 11 : i64} {
  func.func @_param_copy_kernel(%arg0: memref<32x128xf32, #tpu.memory_space<vmem>>, %arg1: memref<32x128xf32, #tpu.memory_space<vmem>>) attributes {dimension_semantics = [], scalar_prefetch = 0 : i64, scratch_operands = 0 : i64, tpu.core_type = #tpu.core_type<tc>} {
    %c0 = arith.constant 0 : index
    %c0_0 = arith.constant 0 : index
    %0 = vector.load %arg0[%c0, %c0_0] : memref<32x128xf32, #tpu.memory_space<vmem>>, vector<32x128xf32>
    %c0_1 = arith.constant 0 : index
    %c0_2 = arith.constant 0 : index
    %1 = vector.load %arg1[%c0_1, %c0_2] : memref<32x128xf32, #tpu.memory_space<vmem>>, vector<32x128xf32>
    tpu.vector_store %arg1[%c0_1, %c0_2], %0 {strides = array<i32>} : memref<32x128xf32, #tpu.memory_space<vmem>>, vector<32x128xf32>,
    return
  }
}

</mosaic_0001>

<bundles_post_ra>
// kernel: tpu_custom_call.1
= control target key start
LH: loop header
LB: loop body
LE: loop exit
PB: predicated region body
PF: predicated region fallthrough
CT: control target
= control target key end

     0   :  { %6 = vsyncpa [#allocation3], 0  ;;  %s144_s0 = inlined_call_operand.hbm [shape: f32[32,128], index: 0, kind: input, shape index: {}]   ;;  %s145_s1 = inlined_call_operand.hbm [shape: f32[32,128], index: 1, kind: output, shape index: {}]  }
   0x1   :  { %7 = vsyncpa [#allocation4], 0  ;;  %s100_s6 = smov [#allocation2]   ;;  %s52_s10 = scalar_lea.hbm %s144_s0, 512 }
   0x2   :  { %s13_s7 = sshll.u32 %s100_s6, 4  ;;  %p53_p0 = scmp.ne.s32.totalorder %s144_s0, %s52_s10  ;;  %s14_s7 = int_to_ptr.vmem [resolvable:$true] %s13_s7 }
   0x3   :  { %p56_p1 = scmp.lt.u32.totalorder %s52_s10, %s144_s0 }
   0x5   :  { %p58_p2 = pnand %p56_p1, %p53_p0 }
   0x7   :  { %61 = shalt.err (!%p58_p2)
}
   0x8   :  { %s62_s15 = scalar_lea.vmem %s14_s7, 512  ;;  %p67_p4 = scmp.lt.s32.totalorder %s14_s7, %s14_s7 }
   0x9   :  { %p63_p3 = scmp.ne.s32.totalorder %s14_s7, %s62_s15  ;;  %p68_p5 = scmp.lt.s32.totalorder %s62_s15, %s62_s15 }
   0xb   :  { %p69_p6 = por %p68_p5, %p67_p4 }
   0xd   :  { %p70_p7 = pnand %p69_p6, %p63_p3 }
   0xf   :  { %73 = shalt.err (!%p70_p7)
}
  0x10   :  { %s101_s16 = smov 128   ;;  %s102_s17 = smov 8  }
  0x11   :  { %19 = dma.hbm_to_vmem [thread:$0]  %s144_s0, 512, %s14_s7, [#allocation3], %s101_s16, %s101_s16, %s102_s17  }
  0x12   :  { %96 = dma.done.wait [#allocation3], 512  }
  0x13   :  { %97 = vsyncadd [#allocation3], 4294966784  ;;  %s103_s20 = smov [#allocation5]   ;;  %v23_v0 = vld [vmem:[#allocation2] sm:$0xff]  ;;  %v24_v1 = vld [vmem:[#allocation2 + $0x8] sm:$0xff] }
  0x14   :  { %s36_s21 = sshll.u32 %s103_s20, 4  ;;  %v25_v2 = vld [vmem:[#allocation2 + $0x10] sm:$0xff]  ;;  %27 = vst [vmem:[#allocation5] sm:$0xff] %v23_v0  ;;  %28 = vst [vmem:[#allocation5 + $0x8] sm:$0xff] %v24_v1  ;;  %v26_v3 = vld [vmem:[#allocation2 + $0x18] sm:$0xff]  ;;  %s37_s21 = int_to_ptr.vmem [resolvable:$true] %s36_s21 }
  0x15   :  { %29 = vst [vmem:[#allocation5 + $0x10] sm:$0xff] %v25_v2  ;;  %30 = vst [vmem:[#allocation5 + $0x18] sm:$0xff] %v26_v3  ;;  %s74_s22 = scalar_lea.vmem %s37_s21, 512  ;;  %p79_p9 = scmp.lt.s32.totalorder %s37_s21, %s37_s21 }
  0x16   :  { %p75_p8 = scmp.ne.s32.totalorder %s37_s21, %s74_s22  ;;  %p80_p10 = scmp.lt.s32.totalorder %s74_s22, %s74_s22 }
  0x18   :  { %p81_p11 = por %p80_p10, %p79_p9 }
  0x1a   :  { %p82_p12 = pnand %p81_p11, %p75_p8 }
  0x1c   :  { %85 = shalt.err (!%p82_p12)
}
  0x1d   :  { %s86_s24 = scalar_lea.hbm %s145_s1, 512 }
  0x1e   :  { %p87_p13 = scmp.ne.s32.totalorder %s145_s1, %s86_s24  ;;  %p90_p0 = scmp.lt.u32.totalorder %s86_s24, %s145_s1 }
  0x20   :  { %p92_p1 = pnand %p90_p0, %p87_p13 }
  0x22   :  { %95 = shalt.err (!%p92_p1)
}
  0x23   :  { %42 = dma.vmem_to_hbm [thread:$0]  %s37_s21, 512, %s145_s1, [#allocation4], %s101_s16, %s101_s16, %s102_s17  }
  0x24   :  { %98 = dma.done.wait [#allocation4], 512  }
  0x25   :  { %99 = vsyncadd [#allocation4], 4294966784 }
  0x26   :  { %46 = vsyncpa [#allocation3], 1 }
  0x27   :  { %47 = vsyncpa [#allocation4], 1 }

</bundles_post_ra>
